<compile_context>
chip_gen: v5e
topology: v5e:2x2
jax: 0.10.0
libtpu: 0.0.40
codegen_flags: <defaults>
</compile_context>

<pallas_src>
import functools

import jax
import jax.numpy as jnp
from jax.experimental import pallas as pl
from jax.experimental.pallas import tpu as pltpu

EPS = 1e-9  # matches nn.BatchNorm1d(..., eps=1e-09)


# --------------------------------------------------------------------------- #
# Hardware introspection / tiling heuristics
# --------------------------------------------------------------------------- #
def _tpu_generation_info():
    """Returns (vmem_bytes_per_core, num_cores_sharing_grid, bf16_vpu_ok)."""
    kind = ""
    try:
        kind = jax.devices()[0].device_kind.lower()
    except Exception:
        pass
    is_v7 = "v7" in kind
    vmem = None
    try:
        vmem = int(pltpu.get_tpu_info().vmem_capacity_bytes)
    except Exception:
        vmem = None
    cap = (64 if is_v7 else 128) * 1024 * 1024
    if not vmem or vmem <= 0:
        vmem = cap
    vmem = min(vmem, cap)
    # Chips whose TensorCores share the 'parallel' grid axes.
    num_cores = 2 if (is_v7 or "v4" in kind or "v5p" in kind) else 1
    # Native bf16 VPU/EUP only on v6e / v7x.
    bf16_vpu = ("v6" in kind) or is_v7
    return vmem, num_cores, bf16_vpu


def _vmem_limit(working_set_bytes, vmem_phys):
    return int(min(int(0.75 * vmem_phys),
                   max(32 * 1024 * 1024, working_set_bytes + 8 * 1024 * 1024)))


def _choose_tile_d(N, D, itemsize, budget, num_cores):
    """Largest lane-aligned feature slab (full batch resident) fitting the budget.

    Returns None when no full-batch slab fits -> caller uses the two-pass path.
    """
    per_col = N * (4 * itemsize + 3 * 4) + 16  # 2x-buffered in+out + ~3 f32 temps
    cands = [d for d in range(128, D + 1, 128) if D % d == 0]
    if not cands:
        # D not a multiple of 128: only a single full-width block is legal.
        return D if (D * per_col <= budget or N <= 64) else None
    fitting = [d for d in cands if d * per_col <= budget]
    if not fitting:
        return cands[0] if N <= 64 else None

    def score(d):
        g = D // d
        steps = -(-g // num_cores)           # per-core grid steps (megacore sharding)
        per_core_work = steps * d            # lane-columns on the busiest core
        pipelined = 0 if steps >= 2 else 1   # >=2 steps -> DMA/compute overlap
        return (per_core_work, pipelined, -d)

    return min(fitting, key=score)


def _choose_two_pass_tiles(N, D, itemsize, budget, num_cores):
    """(tile_d, tile_n) for the batch-tiled two-pass path."""
    cands = [d for d in range(128, D + 1, 128) if D % d == 0] or [D]
    per_elem = 4 * itemsize + 2 * 4          # 2x-buffered in+out + ~2 f32 temps
    n_cap = max(8, (N // 8) * 8)

    def tn_for(d):
        tn = (budget // (d * per_elem)) // 8 * 8
        return int(max(8, min(tn, n_cap, 2048)))

    def score(d):
        g = D // d
        core_split = 0 if g % num_cores == 0 else 1
        decent_rows = 0 if tn_for(d) >= 128 else 1
        return (core_split, decent_rows, -d)

    td = min(cands, key=score)
    return td, tn_for(td)


# --------------------------------------------------------------------------- #
# Kernels
# --------------------------------------------------------------------------- #
def _dice_single_pass_kernel(x_ref, alpha_ref, o_ref, *, use_mxu, bf16_elem):
    # x_ref: (N, TD)   alpha_ref: (1, TD) f32   o_ref: (N, TD)
    n = x_ref.shape[0]
    x_nat = x_ref[...]
    x32 = x_nat.astype(jnp.float32)
    inv_n = 1.0 / n

    # Batch statistics in f32; centered (two-pass) variance is free here because the
    # full batch slab is already resident in VMEM, and avoids E[x^2]-mean^2 cancellation.
    if use_mxu:
        ones = jnp.ones((1, n), dtype=jnp.float32)
        mean = jnp.dot(ones, x32, preferred_element_type=jnp.float32) * inv_n
        centered = x32 - mean
        var = jnp.dot(ones, centered * centered,
                      preferred_element_type=jnp.float32) * inv_n
    else:
        mean = jnp.sum(x32, axis=0, keepdims=True) * inv_n
        centered = x32 - mean
        var = jnp.sum(centered * centered, axis=0, keepdims=True) * inv_n
    rstd = jax.lax.rsqrt(var + EPS)

    alpha32 = alpha_ref[...]
    if bf16_elem:
        # bf16 VPU/EUP path (v6e / v7x only); stats above stay f32.
        x_hat = (centered * rstd).astype(jnp.bfloat16)
        p = jax.nn.sigmoid(x_hat)
        a = alpha32.astype(jnp.bfloat16)
        w = a + p * (1.0 - a)
        o_ref[...] = (x_nat * w).astype(o_ref.dtype)
    else:
        p = jax.nn.sigmoid(centered * rstd)
        w = alpha32 + p * (1.0 - alpha32)
        o_ref[...] = (x32 * w).astype(o_ref.dtype)


def _dice_stats_kernel(x_ref, mean_ref, rstd_ref, *, n_rows, tile_n, use_mxu):
    # Pass 1 of the large-N path. Grid = (D_tiles, N_tiles), batch axis last.
    i = pl.program_id(1)

    @pl.when(i == 0)
    def _():
        mean_ref[...] = jnp.zeros_like(mean_ref)
        rstd_ref[...] = jnp.zeros_like(rstd_ref)

    x32 = x_ref[...].astype(jnp.float32)
    if n_rows % tile_n != 0:
        # Ragged last batch tile: mask out-of-range rows (boundary reads are garbage).
        row = jax.lax.broadcasted_iota(jnp.int32, x32.shape, 0) + i * tile_n
        x32 = jnp.where(row < n_rows, x32, 0.0)

    if use_mxu:
        ones = jnp.ones((1, x32.shape[0]), dtype=jnp.float32)
        s1 = jnp.dot(ones, x32, preferred_element_type=jnp.float32)
        s2 = jnp.dot(ones, x32 * x32, preferred_element_type=jnp.float32)
    else:
        s1 = jnp.sum(x32, axis=0, keepdims=True)
        s2 = jnp.sum(x32 * x32, axis=0, keepdims=True)
    mean_ref[...] += s1
    rstd_ref[...] += s2

    @pl.when(i == pl.num_programs(1) - 1)
    def _():
        inv_n = 1.0 / n_rows
        m = mean_ref[...] * inv_n
        # TODO(synk): Welford-style chunk merging would avoid E[x^2]-mean^2
        # cancellation for inputs with |mean| >> std; fine for typical activations.
        v = jnp.maximum(rstd_ref[...] * inv_n - m * m, 0.0)
        mean_ref[...] = m
        rstd_ref[...] = jax.lax.rsqrt(v + EPS)


def _dice_apply_kernel(x_ref, mean_ref, rstd_ref, alpha_ref, o_ref, *, bf16_elem):
    # Pass 2 of the large-N path: pure elementwise.
    x_nat = x_ref[...]
    x32 = x_nat.astype(jnp.float32)
    x_hat = (x32 - mean_ref[...]) * rstd_ref[...]
    alpha32 = alpha_ref[...]
    if bf16_elem:
        p = jax.nn.sigmoid(x_hat.astype(jnp.bfloat16))
        a = alpha32.astype(jnp.bfloat16)
        w = a + p * (1.0 - a)
        o_ref[...] = (x_nat * w).astype(o_ref.dtype)
    else:
        p = jax.nn.sigmoid(x_hat)
        w = alpha32 + p * (1.0 - alpha32)
        o_ref[...] = (x32 * w).astype(o_ref.dtype)


# --------------------------------------------------------------------------- #
# Wrapper
# --------------------------------------------------------------------------- #
def dice(x, alpha, *, tile_d=None, tile_n=None, force_two_pass=False):
    """x: (N, D), alpha: (D,) -> (N, D). Training-mode Dice forward."""
    N, D = x.shape
    assert alpha.shape == (D,)
    itemsize = jnp.dtype(x.dtype).itemsize
    vmem_phys, num_cores, bf16_vpu = _tpu_generation_info()
    tile_budget = int(0.55 * vmem_phys)
    bf16_elem = bf16_vpu and jnp.dtype(x.dtype) == jnp.dtype(jnp.bfloat16)
    alpha_row = alpha.reshape(1, D).astype(jnp.float32)

    single_td = None
    if not force_two_pass:
        single_td = tile_d if tile_d is not None else _choose_tile_d(
            N, D, itemsize, tile_budget, num_cores)

    # ---------------- Single-pass path: full batch resident per feature slab -----
    if single_td is not None:
        assert D % single_td == 0, "feature dim must be a multiple of the feature tile"
        per_col = N * (4 * itemsize + 3 * 4) + 16
        vmem_limit = _vmem_limit(single_td * per_col, vmem_phys)
        cost = pl.CostEstimate(flops=10 * N * D, transcendentals=N * D,
                               bytes_accessed=2 * N * D * itemsize + 4 * D)
        kernel = functools.partial(_dice_single_pass_kernel,
                                   use_mxu=(N > 128), bf16_elem=bf16_elem)
        return pl.pallas_call(
            kernel,
            out_shape=jax.ShapeDtypeStruct((N, D), x.dtype),
            grid_spec=pltpu.PrefetchScalarGridSpec(
                num_scalar_prefetch=0,
                grid=(D // single_td,),
                in_specs=[
                    pl.BlockSpec((N, single_td), lambda j: (0, j)),
                    pl.BlockSpec((1, single_td), lambda j: (0, j)),
                ],
                out_specs=pl.BlockSpec((N, single_td), lambda j: (0, j)),
            ),
            compiler_params=pltpu.CompilerParams(
                dimension_semantics=("parallel",),
                vmem_limit_bytes=vmem_limit,
            ),
            cost_estimate=cost,
        )(x, alpha_row)

    # ---------------- Two-pass path: batch too large for a full-N slab -----------
    td, tn = _choose_two_pass_tiles(N, D, itemsize, tile_budget, num_cores)
    if tile_d is not None:
        td = tile_d
    if tile_n is not None:
        tn = tile_n
    assert D % td == 0 and tn % 8 == 0
    grid_d = D // td
    grid_n = pl.cdiv(N, tn)

    # Pass 1: per-feature mean / rstd, accumulated over the (arbitrary) batch axis.
    stats_limit = _vmem_limit(tn * td * (2 * itemsize + 2 * 4) + 4 * td * 4, vmem_phys)
    stats_cost = pl.CostEstimate(flops=4 * N * D, transcendentals=D,
                                 bytes_accessed=N * D * itemsize + 2 * D * 4)
    stats_kernel = functools.partial(_dice_stats_kernel, n_rows=N, tile_n=tn,
                                     use_mxu=(tn > 128))
    mean, rstd = pl.pallas_call(
        stats_kernel,
        out_shape=(jax.ShapeDtypeStruct((1, D), jnp.float32),
                   jax.ShapeDtypeStruct((1, D), jnp.float32)),
        grid_spec=pltpu.PrefetchScalarGridSpec(
            num_scalar_prefetch=0,
            grid=(grid_d, grid_n),
            in_specs=[pl.BlockSpec((tn, td), lambda j, i: (i, j))],
            out_specs=(pl.BlockSpec((1, td), lambda j, i: (0, j)),
                       pl.BlockSpec((1, td), lambda j, i: (0, j))),
        ),
        compiler_params=pltpu.CompilerParams(
            dimension_semantics=("parallel", "arbitrary"),
            vmem_limit_bytes=stats_limit,
        ),
        cost_estimate=stats_cost,
    )(x)

    # Pass 2: elementwise apply.
    apply_limit = _vmem_limit(tn * td * (4 * itemsize + 2 * 4) + 6 * td * 4, vmem_phys)
    apply_cost = pl.CostEstimate(flops=7 * N * D, transcendentals=N * D,
                                 bytes_accessed=2 * N * D * itemsize + 3 * D * 4)
    apply_kernel = functools.partial(_dice_apply_kernel, bf16_elem=bf16_elem)
    return pl.pallas_call(
        apply_kernel,
        out_shape=jax.ShapeDtypeStruct((N, D), x.dtype),
        grid_spec=pltpu.PrefetchScalarGridSpec(
            num_scalar_prefetch=0,
            grid=(grid_d, grid_n),
            in_specs=[
                pl.BlockSpec((tn, td), lambda j, i: (i, j)),
                pl.BlockSpec((1, td), lambda j, i: (0, j)),
                pl.BlockSpec((1, td), lambda j, i: (0, j)),
                pl.BlockSpec((1, td), lambda j, i: (0, j)),
            ],
            out_specs=pl.BlockSpec((tn, td), lambda j, i: (i, j)),
        ),
        compiler_params=pltpu.CompilerParams(
            dimension_semantics=("parallel", "parallel"),
            vmem_limit_bytes=apply_limit,
        ),
        cost_estimate=apply_cost,
    )(x, mean, rstd, alpha_row)


# --------------------------------------------------------------------------- #
# Pure-JAX reference (mirrors the PyTorch module in training mode)
# --------------------------------------------------------------------------- #
def dice_ref(x, alpha):
    x32 = x.astype(jnp.float32)
    mean = jnp.mean(x32, axis=0, keepdims=True)
    var = jnp.mean((x32 - mean) ** 2, axis=0, keepdims=True)
    x_hat = (x32 - mean) / jnp.sqrt(var + EPS)
    p = jax.nn.sigmoid(x_hat)
    out = p * x32 + (1.0 - p) * alpha.reshape(1, -1).astype(jnp.float32) * x32
    return out.astype(x.dtype)


if __name__ == "__main__":
    key = jax.random.PRNGKey(0)
    kx, ka, kb = jax.random.split(key, 3)

    # Small shapes consistent with the module: batch=8, input_dim=256.
    N, D = 8, 256
    x = jax.random.normal(kx, (N, D), dtype=jnp.float32)

    # Parameter init exactly as the module's __init__: alpha = zeros(input_dim).
    alpha0 = jnp.zeros((D,), dtype=jnp.float32)
    out0 = jax.block_until_ready(dice(x, alpha0))
    ref0 = dice_ref(x, alpha0)
    assert out0.shape == (N, D)
    assert jnp.allclose(out0, ref0, atol=1e-5, rtol=1e-5), "mismatch (alpha=0)"

    # Nonzero alpha exercises the blend.
    alpha1 = 0.1 * jax.random.normal(ka, (D,), dtype=jnp.float32)
    out1 = jax.block_until_ready(dice(x, alpha1))
    ref1 = dice_ref(x, alpha1)
    assert jnp.allclose(out1, ref1, atol=1e-5, rtol=1e-5), "mismatch (alpha!=0)"

    # Large-N fallback (batch-tiled two-pass), forced at small scale, with a ragged tail.
    N2 = 300
    x2 = jax.random.normal(kb, (N2, D), dtype=jnp.float32)
    out2 = jax.block_until_ready(
        dice(x2, alpha1, force_two_pass=True, tile_n=128, tile_d=128))
    ref2 = dice_ref(x2, alpha1)
    assert jnp.allclose(out2, ref2, atol=1e-5, rtol=1e-5), "mismatch (two-pass)"

    # bf16 input: f32 stats everywhere; bf16 elementwise only on v6e/v7x.
    xb = x.astype(jnp.bfloat16)
    outb = jax.block_until_ready(dice(xb, alpha1))
    refb = dice_ref(xb, alpha1)
    assert outb.dtype == jnp.bfloat16
    assert jnp.allclose(outb.astype(jnp.float32), refb.astype(jnp.float32),
                        atol=0.08, rtol=0.08), "mismatch (bf16)"

    print("KERNEL_OK")
</pallas_src>

<mosaic_0001>
module attributes {stable_mosaic.version = 11 : i64} {
  func.func @_dice_single_pass_kernel(%arg0: i32, %arg1: memref<8x128xf32, #tpu.memory_space<vmem>>, %arg2: memref<1x128xf32, #tpu.memory_space<vmem>>, %arg3: memref<8x128xf32, #tpu.memory_space<vmem>>) attributes {dimension_semantics = [#tpu.dimension_semantics<parallel>], iteration_bounds = array<i64: 2>, scalar_prefetch = 0 : i64, scratch_operands = 0 : i64, tpu.core_type = #tpu.core_type<tc>, window_params = [{transform_indices = @transform_0, window_bounds = array<i64: 8, 128>}, {transform_indices = @transform_1, window_bounds = array<i64: 1, 128>}, {transform_indices = @transform_2, window_bounds = array<i64: 8, 128>}]} {
    %c0 = arith.constant 0 : index
    %c0_0 = arith.constant 0 : index
    %0 = vector.load %arg1[%c0, %c0_0] : memref<8x128xf32, #tpu.memory_space<vmem>>, vector<8x128xf32>
    %cst = arith.constant dense<0.000000e+00> : vector<128xf32>
    %1 = vector.multi_reduction <add>, %0, %cst [0] : vector<8x128xf32> to vector<128xf32>
    %2 = vector.shape_cast %1 : vector<128xf32> to vector<1x128xf32>
    %cst_1 = arith.constant 1.250000e-01 : f32
    %3 = vector.broadcast %cst_1 : f32 to vector<1x128xf32>
    %4 = arith.mulf %2, %3 : vector<1x128xf32>
    %5 = vector.broadcast %4 : vector<1x128xf32> to vector<8x128xf32>
    %6 = arith.subf %0, %5 : vector<8x128xf32>
    %7 = arith.mulf %6, %6 : vector<8x128xf32>
    %cst_2 = arith.constant dense<0.000000e+00> : vector<128xf32>
    %8 = vector.multi_reduction <add>, %7, %cst_2 [0] : vector<8x128xf32> to vector<128xf32>
    %9 = vector.shape_cast %8 : vector<128xf32> to vector<1x128xf32>
    %cst_3 = arith.constant 1.250000e-01 : f32
    %10 = vector.broadcast %cst_3 : f32 to vector<1x128xf32>
    %11 = arith.mulf %9, %10 : vector<1x128xf32>
    %cst_4 = arith.constant 9.99999971E-10 : f32
    %12 = vector.broadcast %cst_4 : f32 to vector<1x128xf32>
    %13 = arith.addf %11, %12 : vector<1x128xf32>
    %14 = math.rsqrt %13 : vector<1x128xf32>
    %c0_5 = arith.constant 0 : index
    %c0_6 = arith.constant 0 : index
    %15 = vector.load %arg2[%c0_5, %c0_6] : memref<1x128xf32, #tpu.memory_space<vmem>>, vector<1x128xf32>
    %16 = vector.broadcast %14 : vector<1x128xf32> to vector<8x128xf32>
    %17 = arith.mulf %6, %16 : vector<8x128xf32>
    %18 = arith.negf %17 : vector<8x128xf32>
    %19 = math.exp %18 : vector<8x128xf32>
    %cst_7 = arith.constant 1.000000e+00 : f32
    %20 = vector.broadcast %cst_7 : f32 to vector<8x128xf32>
    %21 = arith.addf %20, %19 : vector<8x128xf32>
    %22 = arith.divf %20, %21 : vector<8x128xf32>
    %cst_8 = arith.constant 1.000000e+00 : f32
    %23 = vector.broadcast %cst_8 : f32 to vector<1x128xf32>
    %24 = arith.subf %23, %15 : vector<1x128xf32>
    %25 = vector.broadcast %24 : vector<1x128xf32> to vector<8x128xf32>
    %26 = arith.mulf %22, %25 : vector<8x128xf32>
    %27 = vector.broadcast %15 : vector<1x128xf32> to vector<8x128xf32>
    %28 = arith.addf %27, %26 : vector<8x128xf32>
    %29 = arith.mulf %0, %28 : vector<8x128xf32>
    %c0_9 = arith.constant 0 : index
    %c0_10 = arith.constant 0 : index
    %30 = vector.load %arg3[%c0_9, %c0_10] : memref<8x128xf32, #tpu.memory_space<vmem>>, vector<8x128xf32>
    tpu.vector_store %arg3[%c0_9, %c0_10], %29 {strides = array<i32>} : memref<8x128xf32, #tpu.memory_space<vmem>>, vector<8x128xf32>,
    return
  }
  func.func @transform_0(%arg0: i32) -> (i32, i32) {
    %c0_i32 = arith.constant 0 : i32
    %c0_i32_0 = arith.constant 0 : i32
    return %c0_i32, %arg0 : i32, i32
  }
  func.func @transform_1(%arg0: i32) -> (i32, i32) {
    %c0_i32 = arith.constant 0 : i32
    %c0_i32_0 = arith.constant 0 : i32
    return %c0_i32, %arg0 : i32, i32
  }
  func.func @transform_2(%arg0: i32) -> (i32, i32) {
    %c0_i32 = arith.constant 0 : i32
    %c0_i32_0 = arith.constant 0 : i32
    return %c0_i32, %arg0 : i32, i32
  }
}

</mosaic_0001>

<bundles_post_ra>
// kernel: tpu_custom_call.1
= control target key start
LH: loop header
LB: loop body
LE: loop exit
PB: predicated region body
PF: predicated region fallthrough
CT: control target
= control target key end

     0   :  { %7 = vsyncpa [#allocation3], 0  ;;  %s750_s0 = inlined_call_operand.hbm [shape: f32[8,256], index: 0, kind: input, shape index: {}]   ;;  %s751_s1 = inlined_call_operand.hbm [shape: f32[1,256], index: 1, kind: input, shape index: {}]   ;;  %s752_s2 = inlined_call_operand.hbm [shape: f32[8,256], index: 2, kind: output, shape index: {}]  }
   0x1   :  { %9 = vsyncpa [#allocation3 + $0x1], 0 }
   0x2   :  { %10 = vsyncpa [#allocation6], 0 }
   0x3   :  { %12 = vsyncpa [#allocation6 + $0x1], 0 }
   0x4   :  { %13 = vsyncpa [#allocation4], 0 }
   0x5   :  { %15 = vsyncpa [#allocation4 + $0x1], 0  ;;  %s579_s9 = smov 0   ;;  %s581_s10 = smov 0  }
   0x6   :  { %s583_s11 = smov 0   ;;  %s585_s12 = smov 0  }
   0x7 LB: > { %s600_s13 = sadd.s32 4294967295, %s562_s12   ;;  %s361_s14 = sadd.s32 4294967294, %s562_s12   ;;  %s562_s12 = sphi %s585_s12, %s763_s12   ;;  %s558_s11 = sphi %s583_s11, %s762_s11   ;;  %s554_s10 = sphi %s581_s10, %s761_s10   ;;  %s550_s9 = sphi %s579_s9, %s760_s9  }
   0x8   : > { %s604_s15 = sadd.s32 1, %s562_s12   ;;  %s28_s16 = sadd.s32 1, %s558_s11 }
   0x9   : > { %s25_s17 = ssub.s32 %s562_s12, %s604_s15  ;;  %p35_p0 = scmp.ne.s32.totalorder %s558_s11, %s554_s10 }
   0xa   : > { %p26_p1 = scmp.eq.s32.totalorder %s25_s17, 0  ;;  %p36_p2 = scmp.eq.s32.totalorder %s562_s12, 0 }
   0xb   : > { %p41_p3 = scmp.ne.s32.totalorder %s554_s10, %s550_s9  ;;  %p42_p4 = scmp.eq.s32.totalorder %s600_s13, 0 }
   0xc   : > { %s616_s18 = scalar_select %p26_p1, %s558_s11, %s28_s16  }
   0xd   : > { %p618_p5 = por %p36_p2, %p35_p0  ;;  %p622_p6 = por %p42_p4, %p41_p3 }
   0xe   : > { %p91_p7 = scmp.eq.s32.totalorder %s600_s13, 1  ;;  %p97_p8 = scmp.eq.s32.totalorder %s361_s14, 1 }
   0xf   : > { %p391_p10 = scmp.lt.s32.totalorder %s562_s12, 2  ;;  %s638_s23 = sand.u32 1, %s558_s11  }
  0x10   : > { %p629_p11 = por %p91_p7, %p35_p0  ;;  %p633_p12 = por %p97_p8, %p41_p3 }
  0x11   : > { %s365_s24 = sshll.u32 %s562_s12, 3  ;;  %s364_s25 = sshll.u32 %s638_s23, 3 }
  0x12   : > { %s125_s28 = scalar_lea.hbm %s750_s0, %s365_s24  ;;  %s121_s30 = scalar_lea.vmem [#allocation2], %s364_s25 }
  0x13   : > { %s127_s29 = sshll.u32 %s125_s28, 4  ;;  %s129_s3 = sshll.u32 %s121_s30, 4  ;;  %s128_s29 = int_to_ptr.hbm [resolvable:$true] %s127_s29  ;;  %s130_s3 = int_to_ptr.vmem [resolvable:$true] %s129_s3 }
  0x14   : > { %p647_p13 = pnand %p391_p10, %p618_p5  ;;  %p366_p0 = scmp.ge.s32.totalorder %s562_s12, 1 }
  0x15   : > { %p151_p1 = scmp.lt.s32.totalorder %s562_s12, 3  ;;  %s118_s5 = scalar_lea.sflag [#allocation3], %s638_s23 }
  0x16   : > { %s432_s6 = sshra.s32 %s128_s29, 4  ;;  %p436_p3 = pneg %p647_p13  ;;  %s433_s6 = int_to_ptr.hbm [resolvable:$true] %s432_s6 }
  0x17   : > { %s434_s7 = scalar_lea.hbm %s433_s6, 8  ;;  %s439_s16 = scalar_lea.hbm %s750_s0, 16 }
  0x18   : > { %p435_p2 = scmp.ne.s32.totalorder %s433_s6, %s434_s7  ;;  %p440_p5 = scmp.lt.s32.totalorder %s433_s6, %s750_s0 }
  0x19   : > { %p441_p8 = scmp.lt.s32.totalorder %s439_s16, %s434_s7 }
  0x1a   : > { %p437_p4 = pnand %p436_p3, %p435_p2 }
  0x1b   : > { %p442_p10 = por %p441_p8, %p440_p5 }
  0x1c   : > { %p438_p7 = pneg %p437_p4 }
  0x1e   : > { %p443_p9 = pnand %p442_p10, %p438_p7 }
  0x20   : > { %446 = shalt.err (!%p443_p9)
}
  0x21   : > { %383 = dma.hbm_to_vmem [thread:$0]  (!%p647_p13), %s128_s29, 128, %s130_s3, %s118_s5  }
  0x22   : > { %p671_p2 = pnand %p366_p0, %p151_p1  ;;  %s142_s27 = scalar_lea.hbm %s751_s1, %s562_s12 }
  0x23   : > { %s144_s28 = sshll.u32 %s142_s27, 4  ;;  %s139_s30 = scalar_lea.vmem [#allocation5], %s638_s23  ;;  %s145_s28 = int_to_ptr.hbm [resolvable:$true] %s144_s28 }
  0x24   : > { %s146_s6 = sshll.u32 %s139_s30, 4  ;;  %s137_s7 = scalar_lea.sflag [#allocation6], %s638_s23  ;;  %s147_s6 = int_to_ptr.vmem [resolvable:$true] %s146_s6 }
  0x25   : > { %s462_s8 = sshra.s32 %s145_s28, 4  ;;  %s469_s5 = scalar_lea.hbm %s751_s1, 2  ;;  %s463_s8 = int_to_ptr.hbm [resolvable:$true] %s462_s8 }
  0x26   : > { %s464_s14 = scalar_lea.hbm %s463_s8, 1  ;;  %p470_p4 = scmp.lt.s32.totalorder %s463_s8, %s751_s1 }
  0x27   : > { %p465_p9 = scmp.ne.s32.totalorder %s463_s8, %s464_s14  ;;  %p471_p7 = scmp.lt.s32.totalorder %s469_s5, %s464_s14 }
  0x29   : > { %p467_p0 = pnand %p465_p9, %p436_p3  ;;  %p472_p5 = por %p471_p7, %p470_p4 }
  0x2b   : > { %p468_p1 = pneg %p467_p0 }
  0x2d   : > { %p473_p8 = pnand %p472_p5, %p468_p1 }
  0x2f   : > { %476 = shalt.err (!%p473_p8)
}
  0x30   : > { %386 = dma.hbm_to_vmem [thread:$0]  (!%p647_p13), %s145_s28, 16, %s147_s6, %s137_s7  }
  0x31   : > { %155 = sbr.rel (%p671_p2) target bundleno = 149 (0x95), region = 28  ;;  %s695_s23 = sand.u32 (!%p671_p2), 1, %s554_s10  }
  0x32   : > { %s367_s19 = sshll.u32 (!%p671_p2), %s695_s23, 3  ;;  %s158_s25 = scalar_lea.sflag (!%p671_p2), [#allocation3], %s695_s23 }
  0x33   : > { %s161_s26 = scalar_lea.vmem (!%p671_p2), [#allocation2], %s367_s19 }
  0x36   : > { %537 = dma.done.wait (%p622_p6), %s158_s25, 128  }
  0x37   : > { %539 = vsyncadd (%p622_p6), %s158_s25, 4294967168  ;;  %s168_s4 = scalar_lea.sflag [#allocation6], %s695_s23  ;;  %s170_s24 = scalar_lea.vmem [#allocation5], %s695_s23 }
  0x38   : > { %541 = dma.done.wait (%p622_p6), %s168_s4, 16  }
  0x39   : > { %543 = vsyncadd (%p622_p6), %s168_s4, 4294967280  ;;  %v196_v0 = vld [vmem:[%s161_s26] sm:$0xff]  ;;  %s371_s20 = sshll.u32 %s600_s13, 3  ;;  %s195_s6 = scalar_lea.vmem [#allocation7], %s367_s19 }
  0x3a   : > { %v197_v1 = vrot.slane %v196_v0, 4  ;;  %v224_v29 = vld [vmem:[%s170_s24] sm:$0x1]  ;;  %s267_s30 = scalar_lea.hbm %s752_s2, %s371_s20  ;;  %s269_s7 = sshll.u32 %s195_s6, 4  ;;  %s270_s7 = int_to_ptr.vmem [resolvable:$true] %s269_s7 }
  0x3b   : > { %v245_v33 = vsub.f32 1.0, %v224_v29  ;;  %v425_v41 = vld [vmem:[%s170_s24] ss:$0 sm:$0xff]  ;;  %s271_s8 = sshll.u32 %s267_s30, 4  ;;  %s257_s13 = scalar_lea.sflag [#allocation4], %s695_s23  ;;  %s272_s8 = int_to_ptr.hbm [resolvable:$true] %s271_s8 }
  0x3c   : > { %v198_v2 = vadd.f32 %v197_v1, %v196_v0  ;;  %s506_s14 = sshra.s32 %s272_s8, 4  ;;  %s512_s16 = scalar_lea.hbm %s752_s2, 16  ;;  %s507_s14 = int_to_ptr.hbm [resolvable:$true] %s506_s14 }
  0x3d   : > { %v247_v39 = vperm.slane %v245_v33, 0  ;;  %s508_s29 = scalar_lea.hbm %s507_s14, 8  ;;  %p513_p10 = scmp.lt.s32.totalorder %s507_s14, %s752_s2 }
  0x3e   : > { %v199_v3 = vrot.slane %v198_v2, 2  ;;  %p509_p6 = scmp.ne.s32.totalorder %s507_s14, %s508_s29  ;;  %p514_p2 = scmp.lt.s32.totalorder %s512_s16, %s508_s29 }
  0x40   : > { %v200_v4 = vadd.f32 %v199_v3, %v198_v2  ;;  %p510_p13 = pnand %p509_p6, %p629_p11  ;;  %p515_p9 = por %p514_p2, %p513_p10 }
  0x42   : > { %v201_v5 = vrot.slane %v200_v4, 1  ;;  %p511_p3 = pneg %p510_p13 }
  0x44   : > { %v202_v6 = vadd.f32 %v201_v5, %v200_v4  ;;  %p516_p0 = pnand %p515_p9, %p511_p3 }
  0x46   : > { %v203_v7 = vmul.f32 0.125, %v202_v6 }
  0x48   : > { %v204_v8 = vsub.f32 %v196_v0, %v203_v7 }
  0x4a   : > { %v205_v9 = vmul.f32 %v204_v8, %v204_v8 }
  0x4c   : > { %v206_v10 = vrot.slane %v205_v9, 4 }
  0x4e   : > { %v207_v11 = vadd.f32 %v206_v10, %v205_v9 }
  0x50   : > { %v208_v12 = vrot.slane %v207_v11, 2 }
  0x52   : > { %v209_v13 = vadd.f32 %v208_v12, %v207_v11 }
  0x54   : > { %v210_v14 = vrot.slane %v209_v13, 1 }
  0x56   : > { %v211_v15 = vadd.f32 %v210_v14, %v209_v13 }
  0x58   : > { %v212_v16 = vmul.f32 0.125, %v211_v15 }
  0x5a   : > { %v213_v17 = vadd.f32 1e-09, %v212_v16 }
  0x5c   : > { %426 = vrsqrt.f32 %v213_v17  ;;  %vm220_vm0 = vweird.f32 %v213_v17 }
  0x62   : > { %v427_v18 = vpop.eup %426 }
  0x63   : > { %v215_v19 = vmul.f32 %v427_v18, %v213_v17  ;;  %vm221_vm1 = vweird.f32 %v427_v18 }
  0x64   : > { %vm222_vm2 = vmor %vm220_vm0, %vm221_vm1 }
  0x65   : > { %v216_v20 = vmul.f32 %v427_v18, %v215_v19 }
  0x67   : > { %v217_v21 = vmul.f32 0.5, %v216_v20 }
  0x69   : > { %v218_v22 = vsub.f32 1.5, %v217_v21 }
  0x6b   : > { %v219_v23 = vmul.f32 %v427_v18, %v218_v22 }
  0x6d   : > { %v223_v24 = vsel %vm222_vm2, %v427_v18, %v219_v23 }
  0x6e   : > { %v225_v25 = vmul.f32 %v223_v24, %v204_v8 }
  0x70   : > { %v369_v26 = vmul.f32 -1.442695, %v225_v25 }
  0x72   : > { %428 = vpow2.f32 %v369_v26 }
  0x78   : > { %v429_v27 = vpop.eup %428 }
  0x79   : > { %v229_v28 = vadd.f32 1.0, %v429_v27 }
  0x7b   : > { %430 = vrcp.f32 %v229_v28  ;;  %v241_v32 = vand.u32 2147483648, %v229_v28  ;;  %vm235_vm3 = vweird.f32 %v229_v28  ;;  %v239_v35 = vand.u32 2147483647, %v229_v28 }
  0x7d   : > { %v242_v37 = vor.u32 1.1754944e-38, %v241_v32  ;;  %vm240_vm6 = vcmp.eq.f32.partialorder %v239_v35, 8.507059e+37 }
  0x81   : > { %v431_v30 = vpop.eup %430 }
  0x82   : > { %v231_v31 = vmul.f32 %v431_v30, %v229_v28  ;;  %vm236_vm4 = vweird.f32 %v431_v30 }
  0x83   : > { %vm237_vm5 = vmor %vm235_vm3, %vm236_vm4 }
  0x84   : > { %v232_v34 = vsub.f32 1.0, %v231_v31 }
  0x86   : > { %v233_v36 = vmul.f32 %v431_v30, %v232_v34 }
  0x88   : > { %v234_v38 = vadd.f32 %v431_v30, %v233_v36 }
  0x8a   : > { %v238_v40 = vsel %vm237_vm5, %v431_v30, %v234_v38 }
  0x8b   : > { %v243_v42 = vsel %vm240_vm6, %v242_v37, %v238_v40 }
  0x8c   : > { %v249_v43 = vmul.f32 %v247_v39, %v243_v42 }
  0x8e   : > { %v253_v44 = vadd.f32 %v425_v41, %v249_v43 }
  0x90   : > { %v254_v45 = vmul.f32 %v253_v44, %v196_v0 }
  0x92   : > { %255 = vst [vmem:[%s195_s6] sm:$0xff] %v254_v45 }
  0x93   : > { %519 = shalt.err (!%p516_p0)
}
  0x94   : > { %378 = dma.vmem_to_hbm [thread:$0]  (%p629_p11), %s270_s7, 128, %s272_s8, %s257_s13  }
  0x95 PF: > { %s283_s23 = sand.u32 1, %s550_s9   ;;  %p759_p1 = scmp.ge.s32.totalorder %s562_s12, 2 }
  0x96   : > { %s284_s25 = scalar_lea.sflag [#allocation4], %s283_s23 }
  0x97   : > { %p388_p4 = pnand %p759_p1, %p633_p12 }
  0x99   : > { %p389_p7 = pneg %p388_p4 }
  0x9b   : > { %545 = dma.done.wait (%p389_p7), %s284_s25, 128  }
  0x9c   : > { %547 = vsyncadd (%p389_p7), %s284_s25, 4294967168  ;;  %p18_p5 = scmp.ge.s32.totalorder %s604_s15, 4   ;;  %s760_s9 = smov %s554_s10 }
  0x9d   : > { %s761_s10 = smov %s558_s11  ;;  %s762_s11 = smov %s616_s18 }
  0x9e   : > { %s763_s12 = smov %s604_s15  ;;  %20 = sbr.rel (!%p18_p5) target bundleno = 7 (0x7), region = 86 }
  0xa3   :  { %290 = vsyncpa [#allocation3], 1 }
  0xa4   :  { %292 = vsyncpa [#allocation3 + $0x1], 1 }
  0xa5   :  { %293 = vsyncpa [#allocation6], 1 }
  0xa6   :  { %295 = vsyncpa [#allocation6 + $0x1], 1 }
  0xa7   :  { %296 = vsyncpa [#allocation4], 1 }
  0xa8   :  { %298 = vsyncpa [#allocation4 + $0x1], 1 }

</bundles_post_ra>
